<compile_context>
chip_gen: v5e
topology: v5e:2x2
jax: 0.10.0
libtpu: 0.0.40
codegen_flags: <defaults>
</compile_context>

<pallas_src>
import jax
import jax.numpy as jnp
from jax.experimental import pallas as pl
from jax.experimental.pallas import tpu as pltpu


def _round_up(x, m):
    return (x + m - 1) // m * m


def _sublane_pack(dtype):
    # Rows per packed sublane group: 8 (f32), 16 (bf16), 32 (int8 / fp8).
    return max(8, 32 // jnp.dtype(dtype).itemsize)


# Conservative double-buffered working-set cap: fits comfortably under the
# 32 MiB scoped default on v6e/v7x and leaves headroom on v5e's 16 MiB.
_VMEM_TILE_BUDGET = 24 << 20


# ---------------------------------------------------------------------------
# Kernels
# ---------------------------------------------------------------------------
def _linear_kernel_fused(x_ref, w_ref, b_ref, o_ref):
    """K fully VMEM-resident: one MXU pass, bias fused, no scratch copy."""
    o_ref[...] = (
        jnp.dot(x_ref[...], w_ref[...], preferred_element_type=jnp.float32)
        + b_ref[...]
    ).astype(o_ref.dtype)


def _linear_kernel_acc(x_ref, w_ref, b_ref, o_ref, acc_ref):
    """Fallback for huge K: K tiled on grid axis 2 with an f32 accumulator."""
    k = pl.program_id(2)

    @pl.when(k == 0)
    def _():
        acc_ref[...] = jnp.zeros_like(acc_ref)

    acc_ref[...] += jnp.dot(x_ref[...], w_ref[...],
                            preferred_element_type=jnp.float32)

    @pl.when(k == pl.num_programs(2) - 1)
    def _():
        o_ref[...] = (acc_ref[...] + b_ref[...]).astype(o_ref.dtype)


# ---------------------------------------------------------------------------
# Parameter prep (one-time, at init — NOT per forward call)
# ---------------------------------------------------------------------------
def _pick_tile_n(n_pad, target):
    """Largest multiple of 128 <= target dividing n_pad, preferring >=2 blocks
    (so both v7x TensorCores get work on the parallel N axis)."""
    best_any, best_two = 128, None
    for t in range(128, min(target, n_pad) + 1, 128):
        if n_pad % t == 0:
            best_any = t
            if n_pad // t >= 2:
                best_two = t
    return best_two if best_two is not None else best_any


def prepare_classifier_params(weight, bias, *, tile_n=512,
                              compute_dtype=jnp.bfloat16):
    """weight: (num_classes, input_size) in nn.Linear layout; bias: (num_classes,).
    Transposes, casts to the compute dtype and zero-pads to lane-dense shapes."""
    num_classes, in_dim = weight.shape
    cd = jnp.dtype(compute_dtype)

    k_pad = _round_up(in_dim, 128)
    n_pad = _round_up(num_classes, 128)
    tn = _pick_tile_n(n_pad, tile_n)

    w_t = weight.T.astype(cd)                       # (input_size, num_classes)
    if (k_pad, n_pad) != (in_dim, num_classes):
        w_p = jnp.zeros((k_pad, n_pad), cd).at[:in_dim, :num_classes].set(w_t)
    else:
        w_p = w_t
    b_p = jnp.zeros((1, n_pad), jnp.float32).at[0, :num_classes].set(
        bias.astype(jnp.float32))

    return {
        "w": w_p,                   # (k_pad, n_pad) compute_dtype
        "b": b_p,                   # (1, n_pad) f32
        "in_dim": in_dim,
        "num_classes": num_classes,
        "tn": tn,
        "compute_dtype": cd,
    }


# ---------------------------------------------------------------------------
# Forward
# ---------------------------------------------------------------------------
def _pick_tile_m(B, tile_m, pack):
    tm = min(tile_m, _round_up(B, pack))
    tm = _round_up(tm, pack)
    # Shrink while M padding waste exceeds 25% of the padded extent.
    while tm > pack:
        m_pad = _round_up(B, tm)
        if (m_pad - B) * 4 <= m_pad:
            break
        new_tm = max(pack, _round_up(tm // 2, pack))
        if new_tm == tm:
            break
        tm = new_tm
    return tm


def _pick_tile_k(k_pad, tm, tn, cd_itemsize, out_itemsize):
    """Return (tk, collapsed). Prefer tk == k_pad (x resident across N sweep)."""
    def footprint(tk, with_acc):
        f = 2 * (tm * tk + tk * tn) * cd_itemsize          # x + W, double buffered
        f += 2 * tm * tn * out_itemsize + 2 * tn * 4       # out + bias
        if with_acc:
            f += tm * tn * 4
        return f

    if footprint(k_pad, with_acc=False) <= _VMEM_TILE_BUDGET:
        return k_pad, True, footprint(k_pad, False)
    best = 128
    for tk in range(128, k_pad + 1, 128):
        if k_pad % tk == 0 and footprint(tk, True) <= _VMEM_TILE_BUDGET:
            best = tk
    return best, False, footprint(best, True)


def classifier_forward(x, params, *, tile_m=256, w_buffer_count=None):
    """x: (B, input_size) -> (B, num_classes), same semantics as nn.Linear."""
    w_p, b_p = params["w"], params["b"]
    in_dim = params["in_dim"]
    num_classes = params["num_classes"]
    tn = params["tn"]
    cd = params["compute_dtype"]
    assert w_p.dtype == cd, "weight dtype does not match prepared compute_dtype"

    B = x.shape[0]
    out_dtype = x.dtype
    out_itemsize = jnp.dtype(out_dtype).itemsize
    k_pad, n_pad = w_p.shape

    pack = _sublane_pack(cd)
    tm = _pick_tile_m(B, tile_m, pack)
    m_pad = _round_up(B, tm)
    tk, collapsed, footprint = _pick_tile_k(k_pad, tm, tn, cd.itemsize,
                                            out_itemsize)

    # Cast / pad x only when actually needed.
    xc = x.astype(cd) if x.dtype != cd else x
    if (m_pad, k_pad) != (B, in_dim):
        x_p = jnp.zeros((m_pad, k_pad), cd).at[:B, :in_dim].set(xc)
    else:
        x_p = xc

    flops = 2 * m_pad * k_pad * n_pad
    bytes_accessed = (x_p.size * x_p.dtype.itemsize
                      + w_p.size * w_p.dtype.itemsize
                      + b_p.size * b_p.dtype.itemsize
                      + m_pad * n_pad * out_itemsize)
    vmem_limit = int(min(max(2 * footprint, 32 << 20), 48 << 20))

    w_spec_kwargs = {}
    if w_buffer_count is not None:
        # Deeper buffering on the streamed weight if profiling shows exposed DMA.
        w_spec_kwargs["pipeline_mode"] = pl.Buffered(w_buffer_count)

    if collapsed:
        # 2-D grid: x block (i, 0) stays VMEM-resident across the whole N sweep,
        # W streams, bias fused, no accumulator.
        grid = (m_pad // tm, n_pad // tn)
        out_padded = pl.pallas_call(
            _linear_kernel_fused,
            out_shape=jax.ShapeDtypeStruct((m_pad, n_pad), out_dtype),
            grid_spec=pltpu.PrefetchScalarGridSpec(
                num_scalar_prefetch=0,
                grid=grid,
                in_specs=[
                    pl.BlockSpec((tm, k_pad), lambda i, j: (i, 0)),
                    pl.BlockSpec((k_pad, tn), lambda i, j: (0, j),
                                 **w_spec_kwargs),
                    pl.BlockSpec((1, tn), lambda i, j: (0, j)),
                ],
                out_specs=pl.BlockSpec((tm, tn), lambda i, j: (i, j)),
            ),
            compiler_params=pltpu.CompilerParams(
                dimension_semantics=("parallel", "parallel"),
                vmem_limit_bytes=vmem_limit),
            cost_estimate=pl.CostEstimate(
                flops=flops, transcendentals=0, bytes_accessed=bytes_accessed),
        )(x_p, w_p, b_p)
    else:
        # 3-D fallback for K too large to keep resident.
        grid = (m_pad // tm, n_pad // tn, k_pad // tk)
        out_padded = pl.pallas_call(
            _linear_kernel_acc,
            out_shape=jax.ShapeDtypeStruct((m_pad, n_pad), out_dtype),
            grid_spec=pltpu.PrefetchScalarGridSpec(
                num_scalar_prefetch=0,
                grid=grid,
                in_specs=[
                    pl.BlockSpec((tm, tk), lambda i, j, k: (i, k)),
                    pl.BlockSpec((tk, tn), lambda i, j, k: (k, j),
                                 **w_spec_kwargs),
                    pl.BlockSpec((1, tn), lambda i, j, k: (0, j)),
                ],
                out_specs=pl.BlockSpec((tm, tn), lambda i, j, k: (i, j)),
                scratch_shapes=[pltpu.VMEM((tm, tn), jnp.float32)],
            ),
            compiler_params=pltpu.CompilerParams(
                dimension_semantics=("parallel", "parallel", "arbitrary"),
                vmem_limit_bytes=vmem_limit),
            cost_estimate=pl.CostEstimate(
                flops=flops, transcendentals=0, bytes_accessed=bytes_accessed),
        )(x_p, w_p, b_p)

    # Slice away lane/sublane padding (plain-JAX glue, fused under jit).
    return out_padded[:B, :num_classes]


if __name__ == "__main__":
    # Small shapes consistent with the module.
    batch = 8
    input_size = 32
    num_classes = 16

    key = jax.random.PRNGKey(0)
    kx, kw, kb = jax.random.split(key, 3)

    # Deterministic init mirroring nn.Linear's U(-1/sqrt(fan_in), +1/sqrt(fan_in)).
    bound = 1.0 / (input_size ** 0.5)
    weight = jax.random.uniform(kw, (num_classes, input_size),
                                minval=-bound, maxval=bound, dtype=jnp.float32)
    bias = jax.random.uniform(kb, (num_classes,),
                              minval=-bound, maxval=bound, dtype=jnp.float32)
    x = jax.random.normal(kx, (batch, input_size), dtype=jnp.float32)

    # One-time parameter prep: transpose + pad + bf16 cast (default).
    params = prepare_classifier_params(weight, bias)

    fwd = jax.jit(lambda xx: classifier_forward(xx, params))
    y = fwd(x)
    jax.block_until_ready(y)
    assert y.shape == (batch, num_classes)
    assert y.dtype == x.dtype

    # Reference computed with the same bf16 operand precision (f32 accumulate).
    y_ref_bf16 = jnp.dot(x.astype(jnp.bfloat16), weight.T.astype(jnp.bfloat16),
                         preferred_element_type=jnp.float32) + bias
    assert jnp.allclose(y, y_ref_bf16, atol=1e-3, rtol=1e-3)

    # Sanity check against the full-precision nn.Linear semantics.
    y_ref_f32 = x @ weight.T + bias
    assert jnp.allclose(y, y_ref_f32, atol=5e-2, rtol=5e-2)

    print("KERNEL_OK")
</pallas_src>

<mosaic_0001>
module attributes {stable_mosaic.version = 11 : i64} {
  func.func @_linear_kernel_fused(%arg0: i32, %arg1: i32, %arg2: memref<16x128xbf16, #tpu.memory_space<vmem>>, %arg3: memref<128x128xbf16, #tpu.memory_space<vmem>>, %arg4: memref<1x128xf32, #tpu.memory_space<vmem>>, %arg5: memref<16x128xf32, #tpu.memory_space<vmem>>) attributes {dimension_semantics = [#tpu.dimension_semantics<parallel>, #tpu.dimension_semantics<parallel>], iteration_bounds = array<i64: 1, 1>, scalar_prefetch = 0 : i64, scratch_operands = 0 : i64, tpu.core_type = #tpu.core_type<tc>, window_params = [{transform_indices = @transform_0, window_bounds = array<i64: 16, 128>}, {transform_indices = @transform_1, window_bounds = array<i64: 128, 128>}, {transform_indices = @transform_2, window_bounds = array<i64: 1, 128>}, {transform_indices = @transform_3, window_bounds = array<i64: 16, 128>}]} {
    %c0 = arith.constant 0 : index
    %c0_0 = arith.constant 0 : index
    %0 = vector.load %arg2[%c0, %c0_0] : memref<16x128xbf16, #tpu.memory_space<vmem>>, vector<16x128xbf16>
    %c0_1 = arith.constant 0 : index
    %c0_2 = arith.constant 0 : index
    %1 = vector.load %arg3[%c0_1, %c0_2] : memref<128x128xbf16, #tpu.memory_space<vmem>>, vector<128x128xbf16>
    %cst = arith.constant dense<0.000000e+00> : vector<16x128xf32>
    %2 = tpu.matmul %0, %1, %cst {dimension_numbers = #tpu.dot_dimension_numbers<[1], [0], [0], [1], [0, 0, 1, 1], [], []>} : vector<16x128xbf16>, vector<128x128xbf16>, vector<16x128xf32> -> vector<16x128xf32>
    %c0_3 = arith.constant 0 : index
    %c0_4 = arith.constant 0 : index
    %3 = vector.load %arg4[%c0_3, %c0_4] : memref<1x128xf32, #tpu.memory_space<vmem>>, vector<1x128xf32>
    %4 = vector.broadcast %3 : vector<1x128xf32> to vector<16x128xf32>
    %5 = arith.addf %2, %4 : vector<16x128xf32>
    %c0_5 = arith.constant 0 : index
    %c0_6 = arith.constant 0 : index
    %6 = vector.load %arg5[%c0_5, %c0_6] : memref<16x128xf32, #tpu.memory_space<vmem>>, vector<16x128xf32>
    tpu.vector_store %arg5[%c0_5, %c0_6], %5 {strides = array<i32>} : memref<16x128xf32, #tpu.memory_space<vmem>>, vector<16x128xf32>,
    return
  }
  func.func @transform_0(%arg0: i32, %arg1: i32) -> (i32, i32) {
    %c0_i32 = arith.constant 0 : i32
    %c0_i32_0 = arith.constant 0 : i32
    return %arg0, %c0_i32 : i32, i32
  }
  func.func @transform_1(%arg0: i32, %arg1: i32) -> (i32, i32) {
    %c0_i32 = arith.constant 0 : i32
    %c0_i32_0 = arith.constant 0 : i32
    return %c0_i32, %arg1 : i32, i32
  }
  func.func @transform_2(%arg0: i32, %arg1: i32) -> (i32, i32) {
    %c0_i32 = arith.constant 0 : i32
    %c0_i32_0 = arith.constant 0 : i32
    return %c0_i32, %arg1 : i32, i32
  }
  func.func @transform_3(%arg0: i32, %arg1: i32) -> (i32, i32) {
    %c0_i32 = arith.constant 0 : i32
    return %arg0, %arg1 : i32, i32
  }
}

</mosaic_0001>

<bundles_post_ra>
// kernel: _lambda_.1
= control target key start
LH: loop header
LB: loop body
LE: loop exit
PB: predicated region body
PF: predicated region fallthrough
CT: control target
= control target key end

     0   :  { %8 = vsyncpa [#allocation3], 0  ;;  %s202_s15 = smov [#allocation2]   ;;  %s203_s17 = smov 64   ;;  %s240_s0 = inlined_call_operand.vmem [shape: bf16[16,128], index: 0, kind: input, shape index: {}]   ;;  %s241_s1 = inlined_call_operand.hbm [shape: bf16[128,128], index: 1, kind: input, shape index: {}]   ;;  %s242_s2 = inlined_call_operand.vmem [shape: f32[1,128], index: 2, kind: input, shape index: {}]   ;;  %s243_s3 = inlined_call_operand.vmem [shape: f32[16,128], index: 3, kind: output, shape index: {}]  }
   0x1   :  { %s15_s14 = sshll.u32 %s241_s1, 4  ;;  %s17_s16 = sshll.u32 %s202_s15, 4  ;;  %s16_s14 = int_to_ptr.hbm [resolvable:$true] %s15_s14  ;;  %s18_s16 = int_to_ptr.vmem [resolvable:$true] %s17_s16 }
   0x2   :  { %s204_s18 = smov 4  }
   0x3   :  { %23 = dma.hbm_to_vmem [thread:$0]  %s16_s14, 1024, %s18_s16, [#allocation3], %s203_s17, %s203_s17, %s204_s18  }
   0x4   :  { %200 = dma.done.wait [#allocation3], 1024  }
   0x5   :  { %201 = vsyncadd [#allocation3], 4294966272  ;;  %v171_v0 = vld [vmem:[#allocation2 + $0x38] sm:$0xff]  ;;  %v170_v1 = vld [vmem:[#allocation2 + $0x30] sm:$0xff] }
   0x6   :  { %106 = vmatpush.bf16.msra.mxu0 %v171_v0  ;;  %v169_v2 = vld [vmem:[#allocation2 + $0x28] sm:$0xff]  ;;  %v168_v3 = vld [vmem:[#allocation2 + $0x20] sm:$0xff]  ;;  %v167_v4 = vld [vmem:[#allocation2 + $0x18] sm:$0xff] }
   0x7   :  { %v166_v5 = vld [vmem:[#allocation2 + $0x10] sm:$0xff]  ;;  %v165_v6 = vld [vmem:[#allocation2 + $0x8] sm:$0xff]  ;;  %v164_v7 = vld [vmem:[#allocation2] sm:$0xff] }
   0x8   :  { %v163_v8 = vld [vmem:[%s240_s0] sm:$0xff] }
   0x9   :  { %v175_v9 = vld [vmem:[%s242_s2] ss:$0 sm:$0xff] }
   0xa   :  { %107 = vmatpush.bf16.msra.mxu0 %v170_v1 }
   0xe   :  { %108 = vmatpush.bf16.msra.mxu0 %v169_v2 }
  0x12   :  { %109 = vmatpush.bf16.msra.mxu0 %v168_v3 }
  0x16   :  { %110 = vmatpush.bf16.msra.mxu0 %v167_v4 }
  0x1a   :  { %111 = vmatpush.bf16.msra.mxu0 %v166_v5 }
  0x1e   :  { %112 = vmatpush.bf16.msra.mxu0 %v165_v6 }
  0x22   :  { %113 = vmatpush.bf16.msra.mxu0 %v164_v7 }
  0x25   :  { %114 = vmatmul.bf16.vlgmr.msra.gmra.mxu0 %v163_v8 }
  0xa2   :  { %v115_v10 = vpop.f32.mrf.mxu0 }
  0xa3   :  { %v116_v11 = vadd.f32 %v175_v9, %v115_v10 }
  0xa5   :  { %120 = vst [vmem:[%s243_s3] sm:$0xff] %v116_v11 }
  0xaa   :  { %v117_v12 = vpop.f32.mrf.mxu0 }
  0xab   :  { %v118_v13 = vadd.f32 %v175_v9, %v117_v12 }
  0xad   :  { %121 = vst [vmem:[%s243_s3 + $0x8] sm:$0xff] %v118_v13 }
  0xae   :  { %126 = vsyncpa [#allocation3], 1 }

</bundles_post_ra>
